<compile_context>
chip_gen: v7x
topology: tpu7x:2x2x1
jax: 0.10.0
libtpu: 0.0.40
codegen_flags: <defaults>
</compile_context>

<pallas_src>
import functools

import jax
import jax.numpy as jnp
from jax import lax
from jax.experimental import pallas as pl
from jax.experimental.pallas import tpu as pltpu


def _colsum_kernel(x_ref, out_ref, *, tb, n_rows_total, n_blocks_per_shard,
                   mask_rows):
    """Accumulate column sums of batch tiles into the resident output block."""
    s = pl.program_id(0)          # row shard            (parallel)
    b = pl.program_id(2)          # batch tile in shard  (arbitrary / reduction)

    @pl.when(b == 0)
    def _():
        out_ref[...] = jnp.zeros_like(out_ref)

    xt = x_ref[...].astype(jnp.float32)                       # (tb, td)
    if mask_rows:
        # Zero rows past the true batch (ragged tail / over-partitioned shard).
        row0 = (s * n_blocks_per_shard + b) * tb
        rows = row0 + lax.broadcasted_iota(jnp.int32, xt.shape, 0)
        xt = jnp.where(rows < n_rows_total, xt, jnp.float32(0.0))

    # Sublane reduction of this tile, accumulated into the (1, 1, td) block.
    out_ref[...] += jnp.sum(xt, axis=0, keepdims=True)[None]


_TARGET_ROWS = 128  # aim for >=128-row DMA tiles before tiling the lane axis


def _choose_tiles(n_rows, n_cols, itemsize, per_buf_bytes):
    """Pick (row_tile, col_tile) from a per-buffer VMEM byte budget."""
    sub = {4: 8, 2: 16, 1: 32}.get(itemsize, 8)   # sublane multiple per dtype

    # Feature tile: full extent unless D is huge *and* lane-tileable (%128==0).
    if n_cols % 128 == 0 and per_buf_bytes < _TARGET_ROWS * n_cols * itemsize:
        td = (per_buf_bytes // (_TARGET_ROWS * itemsize)) // 128 * 128
        td = min(n_cols, max(128, td))
    else:
        td = n_cols                                # full-extent lane block

    # Batch tile from the remaining budget, rounded to the sublane multiple.
    tb = per_buf_bytes // max(1, td * itemsize)
    tb = max(sub, (tb // sub) * sub)
    if tb >= n_rows:
        tb = n_rows                                # full extent (always legal)
    return tb, td


def div_loss(x: jax.Array, *, vmem_per_buffer_bytes: int | None = None) -> jax.Array:
    """DIVLoss forward. x: (B, ...) logits; returns an f32 scalar.

    vmem_per_buffer_bytes: override of the per-input-buffer VMEM budget
    (testing only); by default it is derived from the chip's VMEM capacity.
    """
    B = x.shape[0]
    x2 = x.reshape(B, -1)                 # flatten-then-mean == mean-then-flatten
    D = x2.shape[1]
    itemsize = x2.dtype.itemsize

    # --- VMEM-aware tile budget (per generation) -----------------------------
    try:
        vmem_cap = int(pltpu.get_tpu_info().vmem_capacity_bytes)
    except Exception:                                    # pragma: no cover
        vmem_cap = 64 << 20                              # conservative (v7x TC)
    if vmem_per_buffer_bytes is None:
        # ~8 MiB/buffer on 128-MiB VMEM (v5e/v6e), ~4 MiB on 64-MiB v7x.
        per_buf = int(min(8 << 20, max(2 << 20, vmem_cap // 16)))
    else:
        per_buf = int(vmem_per_buffer_bytes)

    tb, td = _choose_tiles(B, D, itemsize, per_buf)

    n_bt = pl.cdiv(B, tb)                 # total batch tiles
    n_ft = pl.cdiv(D, td)                 # feature tiles
    n_shards = 2 if n_bt >= 2 else 1      # dual-TC on v7x; harmless on 1-TC chips
    n_bps = pl.cdiv(n_bt, n_shards)       # batch tiles per shard

    mask_rows = (n_shards * n_bps * tb) != B
    clamp_blocks = (n_shards * n_bps) > n_bt

    def x_index_map(s, f, b):
        gb = s * n_bps + b
        if clamp_blocks:                  # static Python flag
            gb = jnp.minimum(gb, n_bt - 1)
        return (gb, f)

    kernel = functools.partial(
        _colsum_kernel,
        tb=tb,
        n_rows_total=B,
        n_blocks_per_shard=n_bps,
        mask_rows=mask_rows,
    )

    # Raise the scoped-VMEM limit so the chosen tiles actually compile.
    vmem_need = 2 * tb * td * itemsize + 4 * td * 4 + (2 << 20)
    vmem_limit = int(min(vmem_cap * 3 // 4, max(vmem_need + (8 << 20), 32 << 20)))

    partial_sums = pl.pallas_call(
        kernel,
        out_shape=jax.ShapeDtypeStruct((n_shards, 1, D), jnp.float32),
        grid_spec=pltpu.PrefetchScalarGridSpec(
            num_scalar_prefetch=0,
            grid=(n_shards, n_ft, n_bps),
            in_specs=[pl.BlockSpec((tb, td), x_index_map)],
            out_specs=pl.BlockSpec((1, 1, td), lambda s, f, b: (s, 0, f)),
        ),
        compiler_params=pltpu.CompilerParams(
            dimension_semantics=("parallel", "parallel", "arbitrary"),
            vmem_limit_bytes=vmem_limit,
        ),
        cost_estimate=pl.CostEstimate(
            flops=2 * B * D,
            transcendentals=0,
            bytes_accessed=x2.size * itemsize + n_shards * D * 4,
        ),
    )(x2)

    # --- tiny O(D) finalize in the wrapper (per the performance review) ------
    col_mean = jnp.sum(partial_sums, axis=(0, 1)) * jnp.float32(1.0 / B)  # (D,)
    p = jax.nn.softmax(col_mean.reshape(1, -1), axis=1)
    return jnp.mean(p * jnp.log(p + jnp.float32(1e-6)))


def _div_loss_reference(x):
    # Pure-JAX reference for validation.
    xf = x.astype(jnp.float32).reshape(x.shape[0], -1)
    m = jnp.mean(xf, axis=0, keepdims=True)          # (1, D)
    p = jax.nn.softmax(m, axis=1)
    return jnp.mean(p * jnp.log(p + 1e-6))


if __name__ == "__main__":
    # Main demo: small shapes consistent with the module's forward.
    key = jax.random.PRNGKey(0)
    x = jax.random.normal(key, (2, 4, 16, 16), dtype=jnp.float32)   # D = 1024
    loss = jax.block_until_ready(div_loss(x))
    ref = jax.block_until_ready(_div_loss_reference(x))
    assert jnp.allclose(loss, ref, rtol=1e-5, atol=1e-6), (loss, ref)

    # Second check: force a tiny VMEM budget so the multi-shard, feature-tiled,
    # masked-ragged-tail streaming path is exercised (bf16 input, B=20 not a
    # multiple of the 16-row bf16 tile). Production callers never set this.
    x2 = jax.random.normal(jax.random.PRNGKey(1), (20, 4, 16, 16),
                           dtype=jnp.bfloat16)
    loss2 = jax.block_until_ready(div_loss(x2, vmem_per_buffer_bytes=4096))
    ref2 = jax.block_until_ready(_div_loss_reference(x2))
    assert jnp.allclose(loss2, ref2, rtol=1e-4, atol=1e-6), (loss2, ref2)

    print("KERNEL_OK")
</pallas_src>

<mosaic_0001>
module attributes {stable_mosaic.version = 11 : i64} {
  func.func @_colsum_kernel(%arg0: i32, %arg1: i32, %arg2: i32, %arg3: memref<2x1024xf32, #tpu.memory_space<vmem>>, %arg4: memref<1x1x1024xf32, #tpu.memory_space<vmem>>) attributes {dimension_semantics = [#tpu.dimension_semantics<parallel>, #tpu.dimension_semantics<parallel>, #tpu.dimension_semantics<arbitrary>], iteration_bounds = array<i64: 1, 1, 1>, scalar_prefetch = 0 : i64, scratch_operands = 0 : i64, tpu.core_type = #tpu.core_type<tc>, window_params = [{transform_indices = @transform_0, window_bounds = array<i64: 2, 1024>}, {transform_indices = @transform_1, window_bounds = array<i64: 1, 1, 1024>}]} {
    %c0_i32 = arith.constant 0 : i32
    %0 = arith.cmpi eq, %arg2, %c0_i32 : i32
    %1 = arith.extui %0 : i1 to i32
    %c0_i32_0 = arith.constant 0 : i32
    %2 = arith.cmpi ne, %1, %c0_i32_0 : i32
    scf.if %2 {
      %cst_8 = arith.constant 0.000000e+00 : f32
      %10 = vector.broadcast %cst_8 : f32 to vector<1x1x1024xf32>
      %c0_9 = arith.constant 0 : index
      %c0_10 = arith.constant 0 : index
      %c0_11 = arith.constant 0 : index
      %11 = vector.load %arg4[%c0_9, %c0_10, %c0_11] : memref<1x1x1024xf32, #tpu.memory_space<vmem>>, vector<1x1x1024xf32>
      tpu.vector_store %arg4[%c0_9, %c0_10, %c0_11], %10 {strides = array<i32>} : memref<1x1x1024xf32, #tpu.memory_space<vmem>>, vector<1x1x1024xf32>,
    } else {
    }
    %c0 = arith.constant 0 : index
    %c0_1 = arith.constant 0 : index
    %3 = vector.load %arg3[%c0, %c0_1] : memref<2x1024xf32, #tpu.memory_space<vmem>>, vector<2x1024xf32>
    %c0_2 = arith.constant 0 : index
    %c0_3 = arith.constant 0 : index
    %c0_4 = arith.constant 0 : index
    %4 = vector.load %arg4[%c0_2, %c0_3, %c0_4] : memref<1x1x1024xf32, #tpu.memory_space<vmem>>, vector<1x1x1024xf32>
    %cst = arith.constant dense<0.000000e+00> : vector<1024xf32>
    %5 = vector.multi_reduction <add>, %3, %cst [0] : vector<2x1024xf32> to vector<1024xf32>
    %6 = vector.shape_cast %5 : vector<1024xf32> to vector<1x1024xf32>
    %7 = vector.shape_cast %6 : vector<1x1024xf32> to vector<1x1x1024xf32>
    %8 = arith.addf %4, %7 : vector<1x1x1024xf32>
    %c0_5 = arith.constant 0 : index
    %c0_6 = arith.constant 0 : index
    %c0_7 = arith.constant 0 : index
    %9 = vector.load %arg4[%c0_5, %c0_6, %c0_7] : memref<1x1x1024xf32, #tpu.memory_space<vmem>>, vector<1x1x1024xf32>
    tpu.vector_store %arg4[%c0_5, %c0_6, %c0_7], %8 {strides = array<i32>} : memref<1x1x1024xf32, #tpu.memory_space<vmem>>, vector<1x1x1024xf32>,
    return
  }
  func.func @transform_0(%arg0: i32, %arg1: i32, %arg2: i32) -> (i32, i32) {
    %c1_i32 = arith.constant 1 : i32
    %0 = arith.muli %arg0, %c1_i32 : i32
    %1 = arith.addi %0, %arg2 : i32
    %c0_i32 = arith.constant 0 : i32
    return %1, %arg1 : i32, i32
  }
  func.func @transform_1(%arg0: i32, %arg1: i32, %arg2: i32) -> (i32, i32, i32) {
    %c0_i32 = arith.constant 0 : i32
    %c0_i32_0 = arith.constant 0 : i32
    return %arg0, %c0_i32, %arg1 : i32, i32, i32
  }
}

</mosaic_0001>

<bundles_post_ra>
// kernel: tpu_custom_call.1
= control target key start
LH: loop header
LB: loop body
LE: loop exit
PB: predicated region body
PF: predicated region fallthrough
CT: control target
= control target key end

     0   :  { %6 = vsyncpa [#allocation3], 0  ;;  %s319_s0 = inlined_call_operand.hbm [shape: f32[2,1024], index: 0, kind: input, shape index: {}]   ;;  %s320_s1 = inlined_call_operand.hbm [shape: f32[1,1,1024], index: 1, kind: output, shape index: {}]  }
   0x1   :  { %7 = vsyncpa [#allocation4], 0  ;;  %s265_s6 = smov [#allocation2]   ;;  %s217_s10 = scalar_lea.hbm %s319_s0, 256 }
   0x2   :  { %s18_s7 = sshll.u32 %s265_s6, 4  ;;  %p218_p0 = scmp.ne.s32.totalorder %s319_s0, %s217_s10  ;;  %s19_s7 = int_to_ptr.vmem [resolvable:$true] %s18_s7 }
   0x3   :  { %p221_p1 = scmp.lt.u32.totalorder %s217_s10, %s319_s0 }
   0x5   :  { %p223_p2 = pnand %p221_p1, %p218_p0 }
   0x7   :  { %226 = shalt.err (!%p223_p2)
}
   0x8   :  { %s227_s15 = scalar_lea.vmem %s19_s7, 256  ;;  %p232_p4 = scmp.lt.s32.totalorder %s19_s7, %s19_s7 }
   0x9   :  { %p228_p3 = scmp.ne.s32.totalorder %s19_s7, %s227_s15  ;;  %p233_p5 = scmp.lt.s32.totalorder %s227_s15, %s227_s15 }
   0xb   :  { %p234_p6 = por %p233_p5, %p232_p4 }
   0xd   :  { %p235_p7 = pnand %p234_p6, %p228_p3 }
   0xf   :  { %238 = shalt.err (!%p235_p7)
}
  0x10   :  { %21 = dma.hbm_to_vmem [thread:$0]  %s319_s0, 256, %s19_s7, [#allocation3]  }
  0x11   :  { %261 = dma.done.wait [#allocation3], 256  }
  0x12   :  { %262 = vsyncadd [#allocation3], 4294967040  ;;  %v40_v0 = vlaneseq  ;;  %v266_v1 = vmov 1983009808   ;;  %v267_v5 = vmov 1966171168  }
  0x13   :  { %v38_v2 = vunpack.c.l.s4 %v266_v1  ;;  %v148_v6 = vunpack.c.l.s4 %v267_v5  ;;  %v31_v8 = vld [vmem:[#allocation2] sm:$0xff]  ;;  %v32_v9 = vld [vmem:[#allocation2 + $0x8] sm:$0xff]  ;;  %vm78_vm0 = vcmask 1041408   ;;  %s268_s0 = smov [#allocation5]  }
  0x14   :  { %v41_v3 = vshrl.u32 %v40_v0, 7  ;;  %v36_v11 = vcombine.high %v31_v8, %v31_v8  ;;  %v53_v13 = vcombine.high %v32_v9, %v32_v9  ;;  %s201_s18 = sshll.u32 %s268_s0, 4  ;;  %s202_s18 = int_to_ptr.vmem [resolvable:$true] %s201_s18 }
  0x15   :  { %v39_v4 = vunpack.c.0.s8 %v38_v2  ;;  %v149_v10 = vunpack.c.0.s8 %v148_v6  ;;  %s239_s19 = scalar_lea.vmem %s202_s18, 128  ;;  %p244_p9 = scmp.lt.s32.totalorder %s202_s18, %s202_s18 }
  0x16   :  { %p240_p8 = scmp.ne.s32.totalorder %s202_s18, %s239_s19  ;;  %p245_p10 = scmp.lt.s32.totalorder %s239_s19, %s239_s19 }
  0x17   :  { %v42_v7 = vsub.s32 %v39_v4, %v41_v3  ;;  %v293_v21 = vsub.s32 %v149_v10, %v41_v3 }
  0x18   :  { %p246_p11 = por %p245_p10, %p244_p9 }
  0x19   :  { %v43_v12 = vrot.slane %v31_v8, %v42_v7  ;;  %v60_v14 = vrot.slane %v32_v9, %v42_v7  ;;  %v50_v15 = vrot.slane %v36_v11, %v42_v7  ;;  %v67_v17 = vrot.slane %v53_v13, %v42_v7 }
  0x1a   :  { %p247_p12 = pnand %p246_p11, %p240_p8 }
  0x1b   :  { %v51_v16 = vcombine.high %v43_v12, %v43_v12  ;;  %v68_v18 = vcombine.high %v60_v14, %v60_v14  ;;  %v79_v19 = vsel %vm78_vm0, %v43_v12, 0.0  ;;  %v107_v20 = vsel %vm78_vm0, %v60_v14, 0.0 }
  0x1c   :  { %v52_v22 = vcombine.high %v50_v15, %v50_v15  ;;  %v69_v23 = vcombine.high %v67_v17, %v67_v17  ;;  %v80_v24 = vrot.slane %v79_v19, 4  ;;  %v93_v27 = vsel %vm78_vm0, %v50_v15, 0.0 }
  0x1d   :  { %v86_v25 = vsel %vm78_vm0, %v51_v16, 0.0  ;;  %v108_v28 = vrot.slane %v107_v20, 4  ;;  %v114_v29 = vsel %vm78_vm0, %v68_v18, 0.0  ;;  %v94_v31 = vrot.slane %v93_v27, 4 }
  0x1e   :  { %v87_v26 = vrot.slane %v86_v25, 4  ;;  %v81_v30 = vadd.f32 %v80_v24, %v79_v19  ;;  %v100_v32 = vsel %vm78_vm0, %v52_v22, 0.0  ;;  %v115_v33 = vrot.slane %v114_v29, 4 }
  0x1f   :  { %v101_v35 = vrot.slane %v100_v32, 4  ;;  %v109_v36 = vadd.f32 %v108_v28, %v107_v20  ;;  %v121_v37 = vsel %vm78_vm0, %v67_v17, 0.0  ;;  %v95_v39 = vadd.f32 %v94_v31, %v93_v27 }
  0x20   :  { %v88_v34 = vadd.f32 %v87_v26, %v86_v25  ;;  %v82_v38 = vrot.slane %v81_v30, 2  ;;  %v116_v40 = vadd.f32 %v115_v33, %v114_v29  ;;  %v122_v41 = vrot.slane %v121_v37, 4 }
  0x21   :  { %v102_v43 = vadd.f32 %v101_v35, %v100_v32  ;;  %v110_v44 = vrot.slane %v109_v36, 2  ;;  %v128_v45 = vsel %vm78_vm0, %v69_v23, 0.0  ;;  %v96_v47 = vrot.slane %v95_v39, 2 }
  0x22   :  { %v89_v42 = vrot.slane %v88_v34, 2  ;;  %v83_v46 = vadd.f32 %v82_v38, %v81_v30  ;;  %v117_v48 = vrot.slane %v116_v40, 2  ;;  %v123_v49 = vadd.f32 %v122_v41, %v121_v37 }
  0x23   :  { %v103_v51 = vrot.slane %v102_v43, 2  ;;  %v111_v52 = vadd.f32 %v110_v44, %v109_v36  ;;  %v129_v53 = vrot.slane %v128_v45, 4  ;;  %v97_v55 = vadd.f32 %v96_v47, %v95_v39 }
  0x24   :  { %v90_v50 = vadd.f32 %v89_v42, %v88_v34  ;;  %v84_v54 = vrot.slane %v83_v46, 1  ;;  %v118_v56 = vadd.f32 %v117_v48, %v116_v40  ;;  %v124_v57 = vrot.slane %v123_v49, 2 }
  0x25   :  { %v104_v59 = vadd.f32 %v103_v51, %v102_v43  ;;  %v112_v60 = vrot.slane %v111_v52, 1  ;;  %v130_v61 = vadd.f32 %v129_v53, %v128_v45  ;;  %v98_v63 = vrot.slane %v97_v55, 1 }
  0x26   :  { %v91_v58 = vrot.slane %v90_v50, 1  ;;  %v85_v62 = vadd.f32 %v84_v54, %v83_v46  ;;  %v119_v0 = vrot.slane %v118_v56, 1  ;;  %v125_v1 = vadd.f32 %v124_v57, %v123_v49 }
  0x27   :  { %v105_v3 = vrot.slane %v104_v59, 1  ;;  %v113_v4 = vadd.f32 %v112_v60, %v111_v52  ;;  %v131_v5 = vrot.slane %v130_v61, 2  ;;  %v99_v6 = vadd.f32 %v98_v63, %v97_v55 }
  0x28   :  { %v92_v2 = vadd.f32 %v91_v58, %v90_v50  ;;  %v120_v7 = vadd.f32 %v119_v0, %v118_v56  ;;  %v126_v8 = vrot.slane %v125_v1, 1 }
  0x29   :  { %v106_v9 = vadd.f32 %v105_v3, %v104_v59  ;;  %v132_v10 = vadd.f32 %v131_v5, %v130_v61 }
  0x2a   :  { %v143_v11 = vcombine.low %v85_v62, %v92_v2  ;;  %v127_v12 = vadd.f32 %v126_v8, %v125_v1  ;;  %v145_v15 = vcombine.low %v113_v4, %v120_v7 }
  0x2b   :  { %v133_v13 = vrot.slane %v132_v10, 1  ;;  %v144_v14 = vcombine.low %v99_v6, %v106_v9 }
  0x2c   :  { %v153_v16 = vrot.slane %v143_v11, %v293_v21  ;;  %v167_v20 = vrot.slane %v145_v15, %v293_v21 }
  0x2d   :  { %v134_v17 = vadd.f32 %v133_v13, %v132_v10  ;;  %v160_v18 = vrot.slane %v144_v14, %v293_v21 }
  0x2f   :  { %v146_v19 = vcombine.low %v127_v12, %v134_v17  ;;  %v175_v22 = vcombine.low %v153_v16, %v160_v18 }
  0x31   :  { %v174_v23 = vrot.slane %v146_v19, %v293_v21  ;;  %v183_v25 = vrot.slane %v175_v22, %v293_v21 }
  0x33   :  { %v176_v24 = vcombine.low %v167_v20, %v174_v23 }
  0x35   :  { %v190_v26 = vrot.slane %v176_v24, %v293_v21 }
  0x37   :  { %v191_v27 = vcombine.low %v183_v25, %v190_v26 }
  0x39   :  { %194 = vst [vmem:[#allocation5] sm:$0xff] %v191_v27 }
  0x3a   :  { %250 = shalt.err (!%p247_p12)
}
  0x3b   :  { %s251_s22 = scalar_lea.hbm %s320_s1, 128 }
  0x3c   :  { %p252_p13 = scmp.ne.s32.totalorder %s320_s1, %s251_s22  ;;  %p255_p0 = scmp.lt.u32.totalorder %s251_s22, %s320_s1 }
  0x3e   :  { %p257_p1 = pnand %p255_p0, %p252_p13 }
  0x40   :  { %260 = shalt.err (!%p257_p1)
}
  0x41   :  { %204 = dma.vmem_to_hbm [thread:$0]  %s202_s18, 128, %s320_s1, [#allocation4]  }
  0x42   :  { %263 = dma.done.wait [#allocation4], 128  }
  0x43   :  { %264 = vsyncadd [#allocation4], 4294967168 }
  0x44   :  { %208 = vsyncpa [#allocation3], 1 }
  0x45   :  { %209 = vsyncpa [#allocation4], 1 }

</bundles_post_ra>
